<compile_context>
chip_gen: v5e
topology: v5e:2x2
jax: 0.10.0
libtpu: 0.0.40
codegen_flags: <defaults>
</compile_context>

<pallas_src>
import functools

import jax
import jax.numpy as jnp
from jax.experimental import pallas as pl
from jax.experimental.pallas import tpu as pltpu

LANE = 128  # vreg lane width; only the hidden (never-in-HBM) dims are padded to this.


def _round_up(x: int, m: int) -> int:
    return ((x + m - 1) // m) * m


def _cdiv(a: int, b: int) -> int:
    return (a + b - 1) // b


def mlp_kernel(x_ref, w1_ref, b1_ref, w2_ref, b2_ref, w3_ref, b3_ref, o_ref):
    # x_ref: (tb, in_dim) f32; w* bf16; b* f32 (1, N); o_ref: (tb, out_dim) f32.
    x = x_ref[...].astype(jnp.bfloat16)                        # in-kernel cast (free VPU work)
    h = jnp.dot(x, w1_ref[...], preferred_element_type=jnp.float32) + b1_ref[...]
    h = jnp.maximum(h, 0.0)                                    # f32 elementwise (v5e-safe)
    h = jnp.dot(h.astype(jnp.bfloat16), w2_ref[...],
                preferred_element_type=jnp.float32) + b2_ref[...]
    h = jnp.maximum(h, 0.0)
    out = jnp.dot(h.astype(jnp.bfloat16), w3_ref[...],
                  preferred_element_type=jnp.float32) + b3_ref[...]
    o_ref[...] = out.astype(o_ref.dtype)


def prepare_params(params, lane: int = LANE):
    """Pad only the hidden dims to `lane` (exact zero padding); weights -> bf16, biases f32.

    Done once outside the hot path (module build / weight update time).
    in_dim (x's feature dim) and out_dim (the output's feature dim) are left UNPADDED so
    the HBM streams of x and the output carry no padding.
    """
    def pad_w(w, pad_in: bool, pad_out: bool):
        w = jnp.asarray(w, jnp.float32)
        fi, fo = w.shape
        pi = _round_up(fi, lane) if pad_in else fi
        po = _round_up(fo, lane) if pad_out else fo
        pw = jnp.zeros((pi, po), jnp.float32).at[:fi, :fo].set(w)
        return pw.astype(jnp.bfloat16)

    def pad_b(b, pad_out: bool):
        b = jnp.asarray(b, jnp.float32).reshape(1, -1)
        fo = b.shape[1]
        po = _round_up(fo, lane) if pad_out else fo
        return jnp.zeros((1, po), jnp.float32).at[:, :fo].set(b)

    return {
        "w1": pad_w(params["w1"], pad_in=False, pad_out=True),   # (in_dim, 128)
        "b1": pad_b(params["b1"], pad_out=True),                 # (1, 128)
        "w2": pad_w(params["w2"], pad_in=True,  pad_out=True),   # (128, 128)
        "b2": pad_b(params["b2"], pad_out=True),                 # (1, 128)
        "w3": pad_w(params["w3"], pad_in=True,  pad_out=False),  # (128, out_dim)
        "b3": pad_b(params["b3"], pad_out=False),                # (1, out_dim)
    }


@functools.partial(jax.jit, static_argnames=("block_batch",))
def network_forward(x, prepped, block_batch: int = 2048):
    """x: (B, in_dim) float32.  prepped: output of prepare_params.  Returns (B, out_dim) f32."""
    B, in_dim = x.shape
    w1, b1 = prepped["w1"], prepped["b1"]
    w2, b2 = prepped["w2"], prepped["b2"]
    w3, b3 = prepped["w3"], prepped["b3"]
    out_dim = w3.shape[1]

    # Batch tiling: always >= 2 grid steps and an even count so the "parallel" grid axis
    # splits evenly across v7x's 2 TensorCores; large default tile amortizes the fixed
    # per-step pipeline overhead.  tb is sublane-aligned (multiple of 8).
    n_blocks = max(2, _cdiv(B, block_batch))
    if n_blocks % 2:
        n_blocks += 1
    tb = _round_up(_cdiv(B, n_blocks), 8)
    b_pad = n_blocks * tb

    # Cheap batch-only padding (no feature padding, no dtype cast -> no extra wide HBM pass).
    xp = x if b_pad == B else jnp.pad(x, ((0, b_pad - B), (0, 0)))

    const_map = lambda i: (0, 0)           # weights/biases: resident, never re-indexed
    batch_map = lambda i: (i, 0)           # x / out: tiled over batch only

    out_padded = pl.pallas_call(
        mlp_kernel,
        out_shape=jax.ShapeDtypeStruct((b_pad, out_dim), jnp.float32),
        grid=(n_blocks,),
        in_specs=[
            pl.BlockSpec((tb, in_dim), batch_map),   # x: unpadded features, contiguous blocks
            pl.BlockSpec(w1.shape, const_map),
            pl.BlockSpec(b1.shape, const_map),
            pl.BlockSpec(w2.shape, const_map),
            pl.BlockSpec(b2.shape, const_map),
            pl.BlockSpec(w3.shape, const_map),
            pl.BlockSpec(b3.shape, const_map),
        ],
        out_specs=pl.BlockSpec((tb, out_dim), batch_map),  # unpadded output: real bytes only
        compiler_params=pltpu.CompilerParams(
            dimension_semantics=("parallel",),
            vmem_limit_bytes=32 * 1024 * 1024,
        ),
    )(xp, w1, b1, w2, b2, w3, b3)

    return out_padded[:B]


def init_params(key, in_dim, hidden_dim, out_dim):
    """Deterministic synthetic init (Kaiming-uniform-like scales, like nn.Linear)."""
    ks = jax.random.split(key, 6)

    def lin(kw, kb, fan_in, fan_out):
        bound = 1.0 / jnp.sqrt(fan_in)
        w = jax.random.uniform(kw, (fan_in, fan_out), jnp.float32, -bound, bound)
        b = jax.random.uniform(kb, (1, fan_out), jnp.float32, -bound, bound)
        return w, b

    w1, b1 = lin(ks[0], ks[1], in_dim, hidden_dim)
    w2, b2 = lin(ks[2], ks[3], hidden_dim, hidden_dim)
    w3, b3 = lin(ks[4], ks[5], hidden_dim, out_dim)
    return {"w1": w1, "b1": b1, "w2": w2, "b2": b2, "w3": w3, "b3": b3}


# TODO(synk): shift_weights_and_biases is a host-side training-time weight perturbation,
# not part of the forward pass; it is intentionally not translated to a kernel.

if __name__ == "__main__":
    in_dim, hidden_dim, out_dim = 16, 32, 4
    batch = 8

    key = jax.random.PRNGKey(0)
    k_x, k_p = jax.random.split(key)
    x = jax.random.normal(k_x, (batch, in_dim), jnp.float32)
    params = init_params(k_p, in_dim, hidden_dim, out_dim)
    prepped = prepare_params(params)

    out = jax.block_until_ready(network_forward(x, prepped))

    # Reference 1: same numerics as the kernel (bf16 matmul operands, f32 accumulation).
    def ref_bf16(x, p):
        def lin(h, w, b):
            return jnp.dot(h.astype(jnp.bfloat16), w.astype(jnp.bfloat16),
                           preferred_element_type=jnp.float32) + b
        h = jnp.maximum(lin(x, p["w1"], p["b1"]), 0.0)
        h = jnp.maximum(lin(h, p["w2"], p["b2"]), 0.0)
        return lin(h, p["w3"], p["b3"])

    # Reference 2: pure f32 (PyTorch semantics) -- looser tolerance due to bf16 matmuls.
    def ref_f32(x, p):
        h = jnp.maximum(x @ p["w1"] + p["b1"], 0.0)
        h = jnp.maximum(h @ p["w2"] + p["b2"], 0.0)
        return h @ p["w3"] + p["b3"]

    assert out.shape == (batch, out_dim)
    assert jnp.allclose(out, ref_bf16(x, params), atol=2e-3, rtol=2e-3)
    assert jnp.allclose(out, ref_f32(x, params), atol=5e-2, rtol=5e-2)
    print("KERNEL_OK")
</pallas_src>

<mosaic_0001>
module attributes {stable_mosaic.version = 11 : i64} {
  func.func @mlp_kernel(%arg0: i32, %arg1: memref<8x16xf32, #tpu.memory_space<vmem>>, %arg2: memref<16x128xbf16, #tpu.memory_space<vmem>>, %arg3: memref<1x128xf32, #tpu.memory_space<vmem>>, %arg4: memref<128x128xbf16, #tpu.memory_space<vmem>>, %arg5: memref<1x128xf32, #tpu.memory_space<vmem>>, %arg6: memref<128x4xbf16, #tpu.memory_space<vmem>>, %arg7: memref<1x4xf32, #tpu.memory_space<vmem>>, %arg8: memref<8x4xf32, #tpu.memory_space<vmem>>) attributes {dimension_semantics = [#tpu.dimension_semantics<parallel>], iteration_bounds = array<i64: 2>, scalar_prefetch = 0 : i64, scratch_operands = 0 : i64, tpu.core_type = #tpu.core_type<tc>, window_params = [{transform_indices = @transform_0, window_bounds = array<i64: 8, 16>}, {pipeline_mode = #tpu.pipeline_mode<synchronous>, transform_indices = @transform_1, window_bounds = array<i64: 16, 128>}, {pipeline_mode = #tpu.pipeline_mode<synchronous>, transform_indices = @transform_2, window_bounds = array<i64: 1, 128>}, {pipeline_mode = #tpu.pipeline_mode<synchronous>, transform_indices = @transform_3, window_bounds = array<i64: 128, 128>}, {pipeline_mode = #tpu.pipeline_mode<synchronous>, transform_indices = @transform_4, window_bounds = array<i64: 1, 128>}, {pipeline_mode = #tpu.pipeline_mode<synchronous>, transform_indices = @transform_5, window_bounds = array<i64: 128, 4>}, {pipeline_mode = #tpu.pipeline_mode<synchronous>, transform_indices = @transform_6, window_bounds = array<i64: 1, 4>}, {transform_indices = @transform_7, window_bounds = array<i64: 8, 4>}]} {
    %c0 = arith.constant 0 : index
    %c0_0 = arith.constant 0 : index
    %0 = vector.load %arg1[%c0, %c0_0] : memref<8x16xf32, #tpu.memory_space<vmem>>, vector<8x16xf32>
    %1 = arith.truncf %0 : vector<8x16xf32> to vector<8x16xbf16>
    %c0_1 = arith.constant 0 : index
    %c0_2 = arith.constant 0 : index
    %2 = vector.load %arg2[%c0_1, %c0_2] : memref<16x128xbf16, #tpu.memory_space<vmem>>, vector<16x128xbf16>
    %cst = arith.constant dense<0.000000e+00> : vector<8x128xf32>
    %3 = tpu.matmul %1, %2, %cst {dimension_numbers = #tpu.dot_dimension_numbers<[1], [0], [0], [1], [0, 0, 1, 1], [], []>} : vector<8x16xbf16>, vector<16x128xbf16>, vector<8x128xf32> -> vector<8x128xf32>
    %c0_3 = arith.constant 0 : index
    %c0_4 = arith.constant 0 : index
    %4 = vector.load %arg3[%c0_3, %c0_4] : memref<1x128xf32, #tpu.memory_space<vmem>>, vector<1x128xf32>
    %5 = vector.broadcast %4 : vector<1x128xf32> to vector<8x128xf32>
    %6 = arith.addf %3, %5 : vector<8x128xf32>
    %cst_5 = arith.constant 0.000000e+00 : f32
    %7 = vector.broadcast %cst_5 : f32 to vector<8x128xf32>
    %8 = arith.maximumf %6, %7 : vector<8x128xf32>
    %9 = arith.truncf %8 : vector<8x128xf32> to vector<8x128xbf16>
    %c0_6 = arith.constant 0 : index
    %c0_7 = arith.constant 0 : index
    %10 = vector.load %arg4[%c0_6, %c0_7] : memref<128x128xbf16, #tpu.memory_space<vmem>>, vector<128x128xbf16>
    %cst_8 = arith.constant dense<0.000000e+00> : vector<8x128xf32>
    %11 = tpu.matmul %9, %10, %cst_8 {dimension_numbers = #tpu.dot_dimension_numbers<[1], [0], [0], [1], [0, 0, 1, 1], [], []>} : vector<8x128xbf16>, vector<128x128xbf16>, vector<8x128xf32> -> vector<8x128xf32>
    %c0_9 = arith.constant 0 : index
    %c0_10 = arith.constant 0 : index
    %12 = vector.load %arg5[%c0_9, %c0_10] : memref<1x128xf32, #tpu.memory_space<vmem>>, vector<1x128xf32>
    %13 = vector.broadcast %12 : vector<1x128xf32> to vector<8x128xf32>
    %14 = arith.addf %11, %13 : vector<8x128xf32>
    %cst_11 = arith.constant 0.000000e+00 : f32
    %15 = vector.broadcast %cst_11 : f32 to vector<8x128xf32>
    %16 = arith.maximumf %14, %15 : vector<8x128xf32>
    %17 = arith.truncf %16 : vector<8x128xf32> to vector<8x128xbf16>
    %c0_12 = arith.constant 0 : index
    %c0_13 = arith.constant 0 : index
    %18 = vector.load %arg6[%c0_12, %c0_13] : memref<128x4xbf16, #tpu.memory_space<vmem>>, vector<128x4xbf16>
    %cst_14 = arith.constant dense<0.000000e+00> : vector<8x4xf32>
    %19 = tpu.matmul %17, %18, %cst_14 {dimension_numbers = #tpu.dot_dimension_numbers<[1], [0], [0], [1], [0, 0, 1, 1], [], []>} : vector<8x128xbf16>, vector<128x4xbf16>, vector<8x4xf32> -> vector<8x4xf32>
    %c0_15 = arith.constant 0 : index
    %c0_16 = arith.constant 0 : index
    %20 = vector.load %arg7[%c0_15, %c0_16] : memref<1x4xf32, #tpu.memory_space<vmem>>, vector<1x4xf32>
    %21 = vector.broadcast %20 : vector<1x4xf32> to vector<8x4xf32>
    %22 = arith.addf %19, %21 : vector<8x4xf32>
    %c0_17 = arith.constant 0 : index
    %c0_18 = arith.constant 0 : index
    %23 = vector.load %arg8[%c0_17, %c0_18] : memref<8x4xf32, #tpu.memory_space<vmem>>, vector<8x4xf32>
    tpu.vector_store %arg8[%c0_17, %c0_18], %22 {strides = array<i32>} : memref<8x4xf32, #tpu.memory_space<vmem>>, vector<8x4xf32>,
    return
  }
  func.func @transform_0(%arg0: i32) -> (i32, i32) {
    %c0_i32 = arith.constant 0 : i32
    %c0_i32_0 = arith.constant 0 : i32
    return %arg0, %c0_i32 : i32, i32
  }
  func.func @transform_1(%arg0: i32) -> (i32, i32) {
    %c0_i32 = arith.constant 0 : i32
    %c0_i32_0 = arith.constant 0 : i32
    %c0_i32_1 = arith.constant 0 : i32
    return %c0_i32, %c0_i32_0 : i32, i32
  }
  func.func @transform_2(%arg0: i32) -> (i32, i32) {
    %c0_i32 = arith.constant 0 : i32
    %c0_i32_0 = arith.constant 0 : i32
    %c0_i32_1 = arith.constant 0 : i32
    return %c0_i32, %c0_i32_0 : i32, i32
  }
  func.func @transform_3(%arg0: i32) -> (i32, i32) {
    %c0_i32 = arith.constant 0 : i32
    %c0_i32_0 = arith.constant 0 : i32
    %c0_i32_1 = arith.constant 0 : i32
    return %c0_i32, %c0_i32_0 : i32, i32
  }
  func.func @transform_4(%arg0: i32) -> (i32, i32) {
    %c0_i32 = arith.constant 0 : i32
    %c0_i32_0 = arith.constant 0 : i32
    %c0_i32_1 = arith.constant 0 : i32
    return %c0_i32, %c0_i32_0 : i32, i32
  }
  func.func @transform_5(%arg0: i32) -> (i32, i32) {
    %c0_i32 = arith.constant 0 : i32
    %c0_i32_0 = arith.constant 0 : i32
    %c0_i32_1 = arith.constant 0 : i32
    return %c0_i32, %c0_i32_0 : i32, i32
  }
  func.func @transform_6(%arg0: i32) -> (i32, i32) {
    %c0_i32 = arith.constant 0 : i32
    %c0_i32_0 = arith.constant 0 : i32
    %c0_i32_1 = arith.constant 0 : i32
    return %c0_i32, %c0_i32_0 : i32, i32
  }
  func.func @transform_7(%arg0: i32) -> (i32, i32) {
    %c0_i32 = arith.constant 0 : i32
    %c0_i32_0 = arith.constant 0 : i32
    return %arg0, %c0_i32 : i32, i32
  }
}

</mosaic_0001>

<bundles_post_ra>
// kernel: network_forward.1
= control target key start
LH: loop header
LB: loop body
LE: loop exit
PB: predicated region body
PF: predicated region fallthrough
CT: control target
= control target key end

     0   :  { %s681_s24 = smov 0   ;;  %s765_s0 = inlined_call_operand.vmem [shape: f32[16,16], index: 0, kind: input, shape index: {}]   ;;  %s766_s1 = inlined_call_operand.vmem [shape: bf16[16,128], index: 1, kind: input, shape index: {}]   ;;  %s767_s2 = inlined_call_operand.vmem [shape: f32[1,128], index: 2, kind: input, shape index: {}]   ;;  %s768_s3 = inlined_call_operand.vmem [shape: bf16[128,128], index: 3, kind: input, shape index: {}]   ;;  %s769_s4 = inlined_call_operand.vmem [shape: f32[1,128], index: 4, kind: input, shape index: {}]   ;;  %s770_s5 = inlined_call_operand.vmem [shape: bf16[128,4], index: 5, kind: input, shape index: {}]   ;;  %s771_s6 = inlined_call_operand.vmem [shape: f32[1,4], index: 6, kind: input, shape index: {}]   ;;  %s772_s7 = inlined_call_operand.vmem [shape: f32[16,4], index: 7, kind: output, shape index: {}]  }
   0x1 LB: > { %s527_s25 = sadd.s32 4294967295, %s639_s24   ;;  %p531_p0 = scmp.ge.s32.totalorder %s639_s24, 1  ;;  %s639_s24 = sphi %s681_s24, %s17_s24  }
   0x2   : > { %p236_p1 = scmp.lt.s32.totalorder %s639_s24, 3 }
   0x4   : > { %p237_p2 = pnand %p531_p0, %p236_p1 }
   0x5   : > { %p266_p3 = scmp.lt.s32.totalorder (!%p237_p2), %s527_s25, 1 }
   0x6   : > { %240 = sbr.rel (%p237_p2) target bundleno = 421 (0x1a5), region = 48 }
   0xb   : > { %v605_v0 = vld [vmem:[%s766_s1] sm:$0xff]  ;;  %v613_v1 = vld [vmem:[%s768_s3 + $0x38] sm:$0xff]  ;;  %s774_s25 = smov (!%p266_p3, %s527_s25), 1  ;;  %v612_v2 = vld [vmem:[%s768_s3 + $0x30] sm:$0xff]  ;;  %vm289_vm0 = vcmask 130048   ;;  %vm472_vm1 = vcmask 31744  }
   0xc   : > { %300 = vmatpush.bf16.msra.mxu0 %v605_v0  ;;  %376 = vmatpush.bf16.msra.mxu1 %v613_v1  ;;  %s532_s9 = sshll.u32 %s774_s25, 3  ;;  %v611_v4 = vld [vmem:[%s768_s3 + $0x28] sm:$0xff]  ;;  %v610_v6 = vld [vmem:[%s768_s3 + $0x20] sm:$0xff]  ;;  %v609_v7 = vld [vmem:[%s768_s3 + $0x18] sm:$0xff] }
   0xd   : > { %s269_s12 = scalar_lea.vmem %s765_s0, %s532_s9  ;;  %v608_v8 = vld [vmem:[%s768_s3 + $0x10] sm:$0xff]  ;;  %v607_v9 = vld [vmem:[%s768_s3 + $0x8] sm:$0xff]  ;;  %v606_v10 = vld [vmem:[%s768_s3] sm:$0xff]  ;;  %s273_s8 = scalar_lea.vmem %s772_s7, %s532_s9 }
   0xe   : > { %v275_v3 = vld [vmem:[%s269_s12] sm:$0xff]  ;;  %v621_v11 = vld [vmem:[%s770_s5 + $0x38] sm:$0xff]  ;;  %v620_v12 = vld [vmem:[%s770_s5 + $0x30] sm:$0xff] }
   0xf   : > { %v276_v5 = vpack.c.bf16 %v275_v3, %v275_v3  ;;  %459 = vmatpush.bf16.msra.mxu2 %v621_v11  ;;  %v619_v13 = vld [vmem:[%s770_s5 + $0x28] sm:$0xff]  ;;  %v618_v14 = vld [vmem:[%s770_s5 + $0x20] sm:$0xff]  ;;  %v617_v15 = vld [vmem:[%s770_s5 + $0x18] sm:$0xff] }
  0x10   : > { %377 = vmatpush.bf16.msra.mxu1 %v612_v2  ;;  %v616_v16 = vld [vmem:[%s770_s5 + $0x10] sm:$0xff]  ;;  %v630_v17 = vld [vmem:[%s767_s2] ss:$0 sm:$0xff]  ;;  %v615_v23 = vld [vmem:[%s770_s5 + $0x8] sm:$0xff] }
  0x11   : > { %538 = vmatmul.msk.bf16.vlgmr.msra.gmra.mxu0 %vm289_vm0, %v276_v5  ;;  %v614_v24 = vld [vmem:[%s770_s5] sm:$0xff] }
  0x12   : > { %v631_v25 = vld [vmem:[%s769_s4] ss:$0 sm:$0xff] }
  0x13   : > { %460 = vmatpush.bf16.msra.mxu2 %v620_v12  ;;  %v632_v31 = vld [vmem:[%s771_s6] ss:$0 sm:$0xff] }
  0x14   : > { %378 = vmatpush.bf16.msra.mxu1 %v611_v4 }
  0x17   : > { %461 = vmatpush.bf16.msra.mxu2 %v619_v13 }
  0x18   : > { %379 = vmatpush.bf16.msra.mxu1 %v610_v6 }
  0x1b   : > { %462 = vmatpush.bf16.msra.mxu2 %v618_v14 }
  0x1c   : > { %380 = vmatpush.bf16.msra.mxu1 %v609_v7 }
  0x1f   : > { %463 = vmatpush.bf16.msra.mxu2 %v617_v15 }
  0x20   : > { %381 = vmatpush.bf16.msra.mxu1 %v608_v8 }
  0x23   : > { %464 = vmatpush.bf16.msra.mxu2 %v616_v16 }
  0x24   : > { %382 = vmatpush.bf16.msra.mxu1 %v607_v9 }
  0x27   : > { %465 = vmatpush.bf16.msra.mxu2 %v615_v23 }
  0x28   : > { %383 = vmatpush.bf16.msra.mxu1 %v606_v10 }
  0x2b   : > { %466 = vmatpush.bf16.msra.mxu2 %v614_v24 }
  0x8e   : > { %v302_v18 = vpop.f32.mrf.mxu0 }
  0x8f   : > { %v303_v19 = vadd.f32 %v630_v17, %v302_v18 }
  0x91   : > { %v306_v20 = vmax.f32 %v303_v19, 0.0 }
  0x93   : > { %v307_v21 = vpack.c.bf16 %v306_v20, %v306_v20 }
  0x95   : > { %384 = vmatmul.bf16.vlgmr.msra.gmra.mxu1 %v307_v21 }
  0x96   : > { %v304_v22 = vpop.f32.mrf.mxu0 }
 0x112   : > { %v385_v26 = vpop.f32.mrf.mxu1 }
 0x113   : > { %v386_v27 = vadd.f32 %v631_v25, %v385_v26 }
 0x115   : > { %v389_v28 = vmax.f32 %v386_v27, 0.0 }
 0x117   : > { %v390_v29 = vpack.c.bf16 %v389_v28, %v389_v28 }
 0x119   : > { %467 = vmatmul.bf16.vlgmr.msra.gmra.mxu2 %v390_v29 }
 0x11a   : > { %v387_v30 = vpop.f32.mrf.mxu1 }
 0x19c   : > { %v468_v32 = vpop.f32.mrf.mxu2 }
 0x19d   : > { %v469_v33 = vadd.f32 %v632_v31, %v468_v32 }
 0x19f   : > { %473 = vst.msk [vmem:[%s273_s8] sm:$0xff] %vm472_vm1, %v469_v33 }
 0x1a4   : > { %v470_v34 = vpop.f32.mrf.mxu2 }
 0x1a5 PF: > { %s17_s24 = sadd.s32 1, %s639_s24  }
 0x1a6   : > { %p14_p4 = scmp.ge.s32.totalorder %s17_s24, 4  }
 0x1a8   :  { %16 = sbr.rel (!%p14_p4) target bundleno = 1 (0x1), region = 78 }

</bundles_post_ra>
